<compile_context>
chip_gen: v6e
topology: v6e:2x2x1
jax: 0.10.0
libtpu: 0.0.40
codegen_flags: <defaults>
</compile_context>

<pallas_src>
import functools

import jax
import jax.numpy as jnp
from jax.experimental import pallas as pl
from jax.experimental.pallas import tpu as pltpu


# ----------------------------------------------------------------------------
# Pallas kernel: one (1, K, TM) patches tile -> one (1, OC, TM) output tile.
# Pure VPU: per output channel, broadcast-multiply the 12 patch rows by the
# 12 weights and reduce over the sublane (K) axis.  Lane axis stays dense.
# ----------------------------------------------------------------------------
def _conv2x2_kernel(w_ref, b_ref, p_ref, o_ref, *, chunk):
    n_oc = o_ref.shape[1]          # 3
    k = p_ref.shape[1]             # 12
    tm = o_ref.shape[2]            # tile_m (multiple of `chunk`)

    # Hoist the per-channel weight broadcasts out of the chunk loop
    # (JAX does not CSE broadcast_in_dim).
    w_bcast = [jnp.broadcast_to(w_ref[oc], (k, chunk)) for oc in range(n_oc)]
    b_vals = [b_ref[oc] for oc in range(n_oc)]          # each shape (1,)

    for j in range(tm // chunk):
        sl = slice(j * chunk, (j + 1) * chunk)
        pc = p_ref[0, :, sl]                             # (K, chunk), lane-dense
        for oc in range(n_oc):
            acc = jnp.sum(pc * w_bcast[oc], axis=0)      # (chunk,)
            o_ref[0, oc, sl] = (acc + b_vals[oc]).astype(o_ref.dtype)


@functools.partial(jax.jit, static_argnames=("tile_m",))
def high_1_forward(x, weight, bias, *, tile_m=8192):
    """Conv2d(3,3,kernel_size=2,stride=2) forward, x in NCHW float32."""
    N, C, H, W = x.shape
    OC, IC, KH, KW = weight.shape
    assert C == IC and KH == 2 and KW == 2
    OH, OW = H // KH, W // KW
    K = IC * KH * KW

    # Drop trailing row/col if H or W is odd (same as PyTorch's floor).
    x = x[:, :, : OH * KH, : OW * KW]

    # ---- im2col with the spatial dim on the fast (lane) axis: (N, K, OH*OW) --
    # [N,C,H,W] -> [N,C,OH,2,OW,2] -> [N,C,2,2,OH,OW] -> [N, C*4, OH*OW]
    # K ordering is (C, KH, KW), matching weight.reshape(OC, C*KH*KW).
    patches = x.reshape(N, C, OH, KH, OW, KW)
    patches = patches.transpose(0, 1, 3, 5, 2, 4).reshape(N, K, OH * OW)

    # ---- tile sizing: lane axis is a multiple of 128, pad the tail ----------
    M_img = OH * OW
    tm = max(128, (int(tile_m) // 128) * 128)
    m128 = ((M_img + 127) // 128) * 128
    tm = min(tm, m128)
    M_pad = ((M_img + tm - 1) // tm) * tm
    if M_pad != M_img:
        patches = jnp.pad(patches, ((0, 0), (0, 0), (0, M_pad - M_img)))

    # Inner lane-chunk (largest of 512/256/128 dividing tm) keeps vreg pressure low.
    chunk = 512 if tm % 512 == 0 else (256 if tm % 256 == 0 else 128)

    # Weights as (OC, K, 1) so K already sits on sublanes; bias as (OC, 1).
    w_col = weight.reshape(OC, K).astype(jnp.float32)[:, :, None]
    b_col = bias.astype(jnp.float32).reshape(OC, 1)

    grid = (N, M_pad // tm)

    out = pl.pallas_call(
        functools.partial(_conv2x2_kernel, chunk=chunk),
        out_shape=jax.ShapeDtypeStruct((N, OC, M_pad), x.dtype),
        grid_spec=pltpu.PrefetchScalarGridSpec(
            num_scalar_prefetch=0,
            grid=grid,
            in_specs=[
                pl.BlockSpec((OC, K, 1), lambda n, m: (0, 0, 0)),   # weights
                pl.BlockSpec((OC, 1), lambda n, m: (0, 0)),          # bias
                pl.BlockSpec((1, K, tm), lambda n, m: (n, 0, m)),    # patches
            ],
            out_specs=pl.BlockSpec((1, OC, tm), lambda n, m: (n, 0, m)),
        ),
        compiler_params=pltpu.CompilerParams(
            dimension_semantics=("parallel", "parallel"),
        ),
    )(w_col, b_col, patches)

    # ---- back to NCHW: pure reshape (plus a small slice only if padded) -----
    y = out[:, :, :M_img].reshape(N, OC, OH, OW)
    return y


def make_params():
    """Deterministic parameters matching High_1.__init__."""
    OC, IC, KH, KW = 3, 3, 2, 2
    w = jnp.full((OC, IC, KH, KW), 0.25, dtype=jnp.float32)
    w = w.at[0, 0, 1, :].set(-0.25)
    # PyTorch leaves the conv bias at its random default; fix it deterministically.
    b = jnp.array([0.05, -0.10, 0.15], dtype=jnp.float32)
    return w, b


def _reference_forward(x, weight, bias):
    """Pure-JAX reference (lax conv) for correctness checking."""
    y = jax.lax.conv_general_dilated(
        x, weight, window_strides=(2, 2), padding="VALID",
        dimension_numbers=("NCHW", "OIHW", "NCHW"))
    return y + bias.reshape(1, -1, 1, 1)


if __name__ == "__main__":
    key = jax.random.PRNGKey(0)
    weight, bias = make_params()

    # Small deterministic checks: tiny padded tile, exact-fit tile, odd H/W.
    shapes = [(2, 3, 16, 16), (2, 3, 32, 32), (1, 3, 31, 22)]
    for i, shp in enumerate(shapes):
        k = jax.random.fold_in(key, i)
        x = jax.random.normal(k, shp, dtype=jnp.float32)

        y = jax.block_until_ready(high_1_forward(x, weight, bias))
        y_ref = _reference_forward(x, weight, bias)

        n, _, h, w = shp
        assert y.shape == (n, 3, h // 2, w // 2), y.shape
        err = float(jnp.max(jnp.abs(y - y_ref)))
        assert err < 1e-5, err

    print("KERNEL_OK")
</pallas_src>

<mosaic_0001>
module attributes {stable_mosaic.version = 11 : i64} {
  func.func @_conv2x2_kernel(%arg0: i32, %arg1: i32, %arg2: memref<3x12x1xf32, #tpu.memory_space<vmem>>, %arg3: memref<3x1xf32, #tpu.memory_space<vmem>>, %arg4: memref<1x12x128xf32, #tpu.memory_space<vmem>>, %arg5: memref<1x3x128xf32, #tpu.memory_space<vmem>>) attributes {dimension_semantics = [#tpu.dimension_semantics<parallel>, #tpu.dimension_semantics<parallel>], iteration_bounds = array<i64: 2, 1>, scalar_prefetch = 0 : i64, scratch_operands = 0 : i64, tpu.core_type = #tpu.core_type<tc>, window_params = [{pipeline_mode = #tpu.pipeline_mode<synchronous>, transform_indices = @transform_0, window_bounds = array<i64: 3, 12, 1>}, {pipeline_mode = #tpu.pipeline_mode<synchronous>, transform_indices = @transform_1, window_bounds = array<i64: 3, 1>}, {transform_indices = @transform_2, window_bounds = array<i64: 1, 12, 128>}, {transform_indices = @transform_3, window_bounds = array<i64: 1, 3, 128>}]} {
    %c0 = arith.constant 0 : index
    %c0_0 = arith.constant 0 : index
    %c0_1 = arith.constant 0 : index
    %0 = vector.load %arg2[%c0, %c0_0, %c0_1] : memref<3x12x1xf32, #tpu.memory_space<vmem>>, vector<1x12x1xf32>
    %1 = vector.shape_cast %0 : vector<1x12x1xf32> to vector<12x1xf32>
    %2 = vector.shape_cast %1 : vector<12x1xf32> to vector<12x1xf32>
    %3 = vector.broadcast %2 : vector<12x1xf32> to vector<12x128xf32>
    %c1 = arith.constant 1 : index
    %c0_2 = arith.constant 0 : index
    %c0_3 = arith.constant 0 : index
    %4 = vector.load %arg2[%c1, %c0_2, %c0_3] : memref<3x12x1xf32, #tpu.memory_space<vmem>>, vector<1x12x1xf32>
    %5 = vector.shape_cast %4 : vector<1x12x1xf32> to vector<12x1xf32>
    %6 = vector.shape_cast %5 : vector<12x1xf32> to vector<12x1xf32>
    %7 = vector.broadcast %6 : vector<12x1xf32> to vector<12x128xf32>
    %c2 = arith.constant 2 : index
    %c0_4 = arith.constant 0 : index
    %c0_5 = arith.constant 0 : index
    %8 = vector.load %arg2[%c2, %c0_4, %c0_5] : memref<3x12x1xf32, #tpu.memory_space<vmem>>, vector<1x12x1xf32>
    %9 = vector.shape_cast %8 : vector<1x12x1xf32> to vector<12x1xf32>
    %10 = vector.shape_cast %9 : vector<12x1xf32> to vector<12x1xf32>
    %11 = vector.broadcast %10 : vector<12x1xf32> to vector<12x128xf32>
    %c0_6 = arith.constant 0 : index
    %c0_7 = arith.constant 0 : index
    %12 = vector.load %arg3[%c0_6, %c0_7] : memref<3x1xf32, #tpu.memory_space<vmem>>, vector<1x1xf32>
    %13 = vector.shape_cast %12 : vector<1x1xf32> to vector<1xf32>
    %c1_8 = arith.constant 1 : index
    %c0_9 = arith.constant 0 : index
    %14 = vector.load %arg3[%c1_8, %c0_9] : memref<3x1xf32, #tpu.memory_space<vmem>>, vector<1x1xf32>
    %15 = vector.shape_cast %14 : vector<1x1xf32> to vector<1xf32>
    %c2_10 = arith.constant 2 : index
    %c0_11 = arith.constant 0 : index
    %16 = vector.load %arg3[%c2_10, %c0_11] : memref<3x1xf32, #tpu.memory_space<vmem>>, vector<1x1xf32>
    %17 = vector.shape_cast %16 : vector<1x1xf32> to vector<1xf32>
    %c0_12 = arith.constant 0 : index
    %c0_13 = arith.constant 0 : index
    %c0_14 = arith.constant 0 : index
    %18 = vector.load %arg4[%c0_12, %c0_13, %c0_14] : memref<1x12x128xf32, #tpu.memory_space<vmem>>, vector<1x12x128xf32>
    %19 = vector.shape_cast %18 : vector<1x12x128xf32> to vector<12x128xf32>
    %20 = arith.mulf %19, %3 : vector<12x128xf32>
    %cst = arith.constant dense<0.000000e+00> : vector<128xf32>
    %21 = vector.multi_reduction <add>, %20, %cst [0] : vector<12x128xf32> to vector<128xf32>
    %22 = vector.broadcast %13 : vector<1xf32> to vector<128xf32>
    %23 = arith.addf %21, %22 : vector<128xf32>
    %c0_15 = arith.constant 0 : index
    %c0_16 = arith.constant 0 : index
    %c0_17 = arith.constant 0 : index
    %24 = vector.load %arg5[%c0_15, %c0_16, %c0_17] : memref<1x3x128xf32, #tpu.memory_space<vmem>>, vector<1x1x128xf32>
    %25 = vector.shape_cast %24 : vector<1x1x128xf32> to vector<128xf32>
    %26 = vector.shape_cast %23 : vector<128xf32> to vector<1x1x128xf32>
    tpu.vector_store %arg5[%c0_15, %c0_16, %c0_17], %26 {strides = array<i32>} : memref<1x3x128xf32, #tpu.memory_space<vmem>>, vector<1x1x128xf32>,
    %27 = arith.mulf %19, %7 : vector<12x128xf32>
    %cst_18 = arith.constant dense<0.000000e+00> : vector<128xf32>
    %28 = vector.multi_reduction <add>, %27, %cst_18 [0] : vector<12x128xf32> to vector<128xf32>
    %29 = vector.broadcast %15 : vector<1xf32> to vector<128xf32>
    %30 = arith.addf %28, %29 : vector<128xf32>
    %c0_19 = arith.constant 0 : index
    %c1_20 = arith.constant 1 : index
    %c0_21 = arith.constant 0 : index
    %31 = vector.load %arg5[%c0_19, %c1_20, %c0_21] : memref<1x3x128xf32, #tpu.memory_space<vmem>>, vector<1x1x128xf32>
    %32 = vector.shape_cast %31 : vector<1x1x128xf32> to vector<128xf32>
    %33 = vector.shape_cast %30 : vector<128xf32> to vector<1x1x128xf32>
    tpu.vector_store %arg5[%c0_19, %c1_20, %c0_21], %33 {strides = array<i32>} : memref<1x3x128xf32, #tpu.memory_space<vmem>>, vector<1x1x128xf32>,
    %34 = arith.mulf %19, %11 : vector<12x128xf32>
    %cst_22 = arith.constant dense<0.000000e+00> : vector<128xf32>
    %35 = vector.multi_reduction <add>, %34, %cst_22 [0] : vector<12x128xf32> to vector<128xf32>
    %36 = vector.broadcast %17 : vector<1xf32> to vector<128xf32>
    %37 = arith.addf %35, %36 : vector<128xf32>
    %c0_23 = arith.constant 0 : index
    %c2_24 = arith.constant 2 : index
    %c0_25 = arith.constant 0 : index
    %38 = vector.load %arg5[%c0_23, %c2_24, %c0_25] : memref<1x3x128xf32, #tpu.memory_space<vmem>>, vector<1x1x128xf32>
    %39 = vector.shape_cast %38 : vector<1x1x128xf32> to vector<128xf32>
    %40 = vector.shape_cast %37 : vector<128xf32> to vector<1x1x128xf32>
    tpu.vector_store %arg5[%c0_23, %c2_24, %c0_25], %40 {strides = array<i32>} : memref<1x3x128xf32, #tpu.memory_space<vmem>>, vector<1x1x128xf32>,
    return
  }
  func.func @transform_0(%arg0: i32, %arg1: i32) -> (i32, i32, i32) {
    %c0_i32 = arith.constant 0 : i32
    %c0_i32_0 = arith.constant 0 : i32
    %c0_i32_1 = arith.constant 0 : i32
    %c0_i32_2 = arith.constant 0 : i32
    return %c0_i32, %c0_i32_0, %c0_i32_1 : i32, i32, i32
  }
  func.func @transform_1(%arg0: i32, %arg1: i32) -> (i32, i32) {
    %c0_i32 = arith.constant 0 : i32
    %c0_i32_0 = arith.constant 0 : i32
    %c0_i32_1 = arith.constant 0 : i32
    return %c0_i32, %c0_i32_0 : i32, i32
  }
  func.func @transform_2(%arg0: i32, %arg1: i32) -> (i32, i32, i32) {
    %c0_i32 = arith.constant 0 : i32
    %c0_i32_0 = arith.constant 0 : i32
    return %arg0, %c0_i32, %arg1 : i32, i32, i32
  }
  func.func @transform_3(%arg0: i32, %arg1: i32) -> (i32, i32, i32) {
    %c0_i32 = arith.constant 0 : i32
    %c0_i32_0 = arith.constant 0 : i32
    return %arg0, %c0_i32, %arg1 : i32, i32, i32
  }
}

</mosaic_0001>

<bundles_post_ra>
// kernel: high_1_forward.1
= control target key start
LH: loop header
LB: loop body
LE: loop exit
PB: predicated region body
PF: predicated region fallthrough
CT: control target
= control target key end

     0   :  { %s459_s12 = smov 0   ;;  %s461_s13 = smov 0   ;;  %s527_s0 = inlined_call_operand.vmem [shape: f32[3,12,1], index: 0, kind: input, shape index: {}]   ;;  %s528_s1 = inlined_call_operand.vmem [shape: f32[3,1], index: 1, kind: input, shape index: {}]   ;;  %s529_s2 = inlined_call_operand.vmem [shape: f32[2,12,128], index: 2, kind: input, shape index: {}]   ;;  %s530_s3 = inlined_call_operand.vmem [shape: f32[2,3,128], index: 3, kind: output, shape index: {}]  }
   0x1   :  { %s463_s14 = smov 0  }
   0x2 LB: > { %s25_s15 = sadd.s32 1, %s432_s13  ;;  %p376_p0 = scmp.ge.s32.totalorder %s436_s14, 1  ;;  %s436_s14 = sphi %s463_s14, %s13_s14   ;;  %s432_s13 = sphi %s461_s13, %s532_s13   ;;  %s428_s12 = sphi %s459_s12, %s531_s12  }
   0x3   : > { %p27_p1 = scmp.ge.s32.totalorder %s25_s15, 2  ;;  %p156_p2 = scmp.lt.s32.totalorder %s436_s14, 3 }
   0x5   : > { %s534_s15 = smov (%p27_p1, %s25_s15), 0  ;;  %p157_p3 = pnand %p376_p0, %p156_p2 }
   0x6   : > { %p185_p4 = scmp.lt.s32.totalorder (!%p157_p3), %s428_s12, 1 }
   0x7   : > { %160 = sbr.rel (%p157_p3) target bundleno = 165 (0xa5), region = 32 }
   0xc   : > { %v383_v0 = vld [vmem:[%s527_s0 + $0x28] sm:$0xf]  ;;  %v438_v2 = vmov 0   ;;  %v381_v3 = vld [vmem:[%s527_s0 + $0x18] sm:$0xf]  ;;  %v200_v4 = vld [vmem:[%s527_s0] sm:$0xff] }
   0xd   : > { %v201_v1 = vld [vmem:[%s527_s0 + $0x8] sm:$0xf]  ;;  %413 = vset.pattern.permute.xlu1 %v438_v2  ;;  %412 = vset.pattern.permute.xlu0 %v438_v2  ;;  %v380_v5 = vld [vmem:[%s527_s0 + $0x10] sm:$0xff]  ;;  %v382_v6 = vld [vmem:[%s527_s0 + $0x20] sm:$0xff]  ;;  %s536_s12 = smov (!%p185_p4, %s428_s12), 1  ;;  %vm245_vm0 = vcmask 1043456  }
   0xe   : > { %235 = vperm.xlu1 %413, %v383_v0   ;;  %209 = vperm.xlu0 %412, %v201_v1   ;;  %v238_v7 = vld [vmem:[%s528_s1] sm:$0x1]  ;;  %v239_v8 = vld [vmem:[%s528_s1 + $0x1] sm:$0x1]  ;;  %v240_v9 = vld [vmem:[%s528_s1 + $0x2] sm:$0x1] }
   0xf   : > { %s386_s7 = sshll.u32 %s536_s12, 4  ;;  %s379_s11 = sshll.u32 %s536_s12, 2 }
  0x10   : > { %s192_s10 = scalar_lea.vmem %s529_s2, %s386_s7  ;;  %s199_s18 = scalar_lea.vmem %s530_s3, %s379_s11 }
  0x11   : > { %v242_v10 = vld [vmem:[%s192_s10 + $0x8] sm:$0xf]  ;;  %v241_v14 = vld [vmem:[%s192_s10] sm:$0xff] }
  0x12   : > { %222 = vperm.xlu0 %412, %v381_v3   ;;  %204 = vperm.xlu1 %413, %v200_v4  }
  0x16   : > { %217 = vperm.xlu0 %412, %v380_v5   ;;  %230 = vperm.xlu1 %413, %v382_v6  }
  0x1a   : > { %256 = vperm.xlu0 %412, %v238_v7   ;;  %273 = vperm.xlu1 %413, %v239_v8  }
  0x1e   : > { %290 = vperm.xlu0 %412, %v240_v9  }
  0x89   : > { %v236_v11 = vpop.permute.xlu1 %235  ;;  %v210_v12 = vpop.permute.xlu0 %209 }
  0x8a   : > { %v244_v13 = vmul.f32 %v242_v10, %v210_v12  ;;  %v279_v18 = vmul.f32 %v242_v10, %v236_v11 }
  0x8c   : > { %v246_v19 = vsel %vm245_vm0, %v244_v13, 0.0  ;;  %v280_v27 = vsel %vm245_vm0, %v279_v18, 0.0 }
  0x8d   : > { %v223_v15 = vpop.permute.xlu0 %222  ;;  %v205_v16 = vpop.permute.xlu1 %204 }
  0x8e   : > { %v243_v17 = vmul.f32 %v241_v14, %v205_v16  ;;  %v262_v20 = vmul.f32 %v242_v10, %v223_v15 }
  0x90   : > { %v247_v21 = vadd.f32 %v246_v19, %v243_v17  ;;  %v263_v28 = vsel %vm245_vm0, %v262_v20, 0.0 }
  0x91   : > { %v218_v22 = vpop.permute.xlu0 %217  ;;  %v231_v23 = vpop.permute.xlu1 %230 }
  0x92   : > { %v248_v24 = vrot.slane %v247_v21, 4  ;;  %v261_v25 = vmul.f32 %v241_v14, %v218_v22  ;;  %v278_v26 = vmul.f32 %v241_v14, %v231_v23 }
  0x94   : > { %v249_v29 = vadd.f32 %v248_v24, %v247_v21  ;;  %v264_v30 = vadd.f32 %v263_v28, %v261_v25  ;;  %v281_v31 = vadd.f32 %v280_v27, %v278_v26 }
  0x95   : > { %v257_v41 = vpop.permute.xlu0 %256  ;;  %v274_v50 = vpop.permute.xlu1 %273 }
  0x96   : > { %v265_v32 = vrot.slane %v264_v30, 4  ;;  %v282_v33 = vrot.slane %v281_v31, 4  ;;  %v250_v34 = vrot.slane %v249_v29, 2 }
  0x98   : > { %v266_v35 = vadd.f32 %v265_v32, %v264_v30  ;;  %v283_v36 = vadd.f32 %v282_v33, %v281_v31  ;;  %v251_v37 = vadd.f32 %v250_v34, %v249_v29 }
  0x99   : > { %v291_v51 = vpop.permute.xlu0 %290 }
  0x9a   : > { %v252_v38 = vrot.slane %v251_v37, 1  ;;  %v267_v39 = vrot.slane %v266_v35, 2  ;;  %v284_v40 = vrot.slane %v283_v36, 2 }
  0x9c   : > { %v253_v42 = vadd.f32 %v252_v38, %v251_v37  ;;  %v268_v43 = vadd.f32 %v267_v39, %v266_v35  ;;  %v285_v44 = vadd.f32 %v284_v40, %v283_v36 }
  0x9e   : > { %v259_v45 = vadd.f32 %v257_v41, %v253_v42  ;;  %v269_v46 = vrot.slane %v268_v43, 1  ;;  %v286_v47 = vrot.slane %v285_v44, 1 }
  0xa0   : > { %260 = vst [vmem:[%s199_s18] sm:$0x1] %v259_v45  ;;  %v270_v48 = vadd.f32 %v269_v46, %v268_v43  ;;  %v287_v49 = vadd.f32 %v286_v47, %v285_v44 }
  0xa2   : > { %v276_v52 = vadd.f32 %v274_v50, %v270_v48  ;;  %v293_v53 = vadd.f32 %v291_v51, %v287_v49 }
  0xa4   : > { %277 = vst [vmem:[%s199_s18 + $0x1] sm:$0x1] %v276_v52  ;;  %294 = vst [vmem:[%s199_s18 + $0x2] sm:$0x1] %v293_v53 }
  0xa5 PF: > { %s13_s14 = sadd.s32 1, %s436_s14   ;;  %s531_s12 = smov %s432_s13 }
  0xa6   : > { %p10_p5 = scmp.ge.s32.totalorder %s13_s14, 4   ;;  %s532_s13 = smov %s534_s15 }
  0xa8   :  { %12 = sbr.rel (!%p10_p5) target bundleno = 2 (0x2), region = 64 }

</bundles_post_ra>
